<compile_context>
chip_gen: v7x
topology: tpu7x:2x2x1
jax: 0.10.0
libtpu: 0.0.40
codegen_flags: <defaults>
</compile_context>

<pallas_src>
import numpy as np
import jax
import jax.numpy as jnp
from jax.experimental import pallas as pl
from jax.experimental.pallas import tpu as pltpu


# ----------------------------------------------------------------------------
# Host-side index construction (mirrors Coder.__init__: diag-major tril order).
# ----------------------------------------------------------------------------
def _tril_indices_coder(out_dim, eta_dim):
    ldiag, d, c = out_dim, 0, 0
    rows, cols = [], []
    for _ in range(eta_dim - out_dim):
        rows.append(c + d)
        cols.append(c)
        if c == ldiag - 1:
            ldiag -= 1
            c = 0
            d += 1
        else:
            c += 1
    return rows, cols


def _round_up(n, m):
    return ((n + m - 1) // m) * m


def _fold_scatter_into_w2(W2, b2, out_dim):
    """Fold the 0/1 scatter matrix into W2/b2 and pad lanes to a 128-multiple.

    Output lane layout: [ mu (out_dim) | Lambda flat (out_dim^2) | zero pad ].
    Also returns the f32 mask (1, padded) marking the flat diagonal positions
    (where exp must be applied post-scatter).
    """
    W2 = np.asarray(W2, np.float32)
    b2 = np.asarray(b2, np.float32)
    eta_dim = W2.shape[1]
    lam_dim = out_dim * out_dim
    slab_w = out_dim + lam_dim
    padded = _round_up(slab_w, 128)

    rows, cols = _tril_indices_coder(out_dim, eta_dim)
    S = np.zeros((eta_dim - out_dim, lam_dim), np.float32)
    for i, (r, c) in enumerate(zip(rows, cols)):
        S[i, r * out_dim + c] = 1.0

    W2f = np.zeros((W2.shape[0], padded), np.float32)
    W2f[:, :out_dim] = W2[:, :out_dim]
    W2f[:, out_dim:out_dim + lam_dim] = W2[:, out_dim:] @ S

    b2f = np.zeros((1, padded), np.float32)
    b2f[:, :out_dim] = b2[:, :out_dim]
    b2f[:, out_dim:out_dim + lam_dim] = b2[:, out_dim:] @ S

    mask = np.zeros((1, padded), np.float32)
    for r in range(out_dim):
        mask[0, out_dim + r * out_dim + r] = 1.0

    return jnp.asarray(W2f), jnp.asarray(b2f), jnp.asarray(mask)


def prepare_coder_params(params, out_dim, mxu_dtype=jnp.float32):
    """Host-side, one-time preparation: fold scatter, cast MXU operands."""
    W2f, b2f, mask = _fold_scatter_into_w2(params["W2"], params["b2"], out_dim)
    return {
        "W1": params["W1"].astype(mxu_dtype),   # MXU operand
        "b1": params["b1"].astype(jnp.float32),  # elementwise stays f32
        "W2": W2f.astype(mxu_dtype),             # folded, padded MXU operand
        "b2": b2f,                               # f32
        "mask": mask,                            # f32 diag-position mask
    }


# ----------------------------------------------------------------------------
# Fused kernel: eta-MLP (MXU) + folded triangular scatter + masked exp (EUP).
# ----------------------------------------------------------------------------
def coder_kernel(x_ref, w1_ref, b1_ref, w2_ref, b2_ref, mask_ref, out_ref):
    # hidden layer: MXU matmul with f32 accumulation, bias + tanh in f32
    h = jnp.tanh(
        jnp.dot(x_ref[...], w1_ref[...], preferred_element_type=jnp.float32)
        + b1_ref[...]
    )
    # output layer against the folded/padded W2': produces [mu | Lambda_flat | pad]
    y = (
        jnp.dot(h.astype(w2_ref.dtype), w2_ref[...],
                preferred_element_type=jnp.float32)
        + b2_ref[...]
    )
    # exp only on the flat diagonal positions (constant mask; EUP slot);
    # upper-triangle / pad lanes are exactly zero by construction of W2'/b2'.
    out_ref[...] = jnp.where(mask_ref[...] > 0.5, jnp.exp(y), y)


# ----------------------------------------------------------------------------
# Wrapper.
# ----------------------------------------------------------------------------
def _choose_b_tile(B):
    # Small B: one grid step over the whole (8-row padded) batch.
    # Large B: 512-row tiles (multiple of 8 f32 sublanes and of the MXU rows);
    # yields >=2 grid steps so "parallel" can shard across v7x's 2 TensorCores.
    if B <= 512:
        return max(8, _round_up(B, 8))
    return 512


def coder_forward(x, prep, out_dim, *, b_tile=None):
    """Fused Coder forward. Returns (mu[B, out_dim], scale_tril[B, out_dim, out_dim])."""
    B, in_dim = x.shape
    hidden = prep["W1"].shape[1]
    padded_w = prep["W2"].shape[1]
    lam_dim = out_dim * out_dim

    if b_tile is None:
        b_tile = _choose_b_tile(B)
    grid_n = pl.cdiv(B, b_tile)
    B_pad = grid_n * b_tile

    xd = x.astype(prep["W1"].dtype)
    if B_pad != B:
        xd = jnp.pad(xd, ((0, B_pad - B), (0, 0)))

    const0 = lambda i: (0, 0)          # weights/mask: VMEM-resident, DMA'd once
    batch_map = lambda i: (i, 0)       # activations / output slab: tiled over batch

    slab = pl.pallas_call(
        coder_kernel,
        out_shape=jax.ShapeDtypeStruct((B_pad, padded_w), jnp.float32),
        grid=(grid_n,),
        in_specs=[
            pl.BlockSpec((b_tile, in_dim), batch_map),
            pl.BlockSpec((in_dim, hidden), const0),
            pl.BlockSpec((1, hidden), const0),
            pl.BlockSpec((hidden, padded_w), const0),
            pl.BlockSpec((1, padded_w), const0),
            pl.BlockSpec((1, padded_w), const0),
        ],
        out_specs=pl.BlockSpec((b_tile, padded_w), batch_map),
        compiler_params=pltpu.CompilerParams(
            dimension_semantics=("parallel",)
        ),
    )(xd, prep["W1"], prep["b1"], prep["W2"], prep["b2"], prep["mask"])

    # metadata-only slicing / reshape of the lane-dense slab
    mu = slab[:B, :out_dim]
    scale_tril = slab[:B, out_dim:out_dim + lam_dim].reshape(B, out_dim, out_dim)
    return mu, scale_tril


# ----------------------------------------------------------------------------
# Plain-JAX reference (faithful transcription of the PyTorch forward).
# ----------------------------------------------------------------------------
def coder_forward_ref(x, params, out_dim):
    h = jnp.tanh(x @ params["W1"] + params["b1"])
    eta = h @ params["W2"] + params["b2"]
    mu = eta[:, :out_dim]
    lbda = jnp.concatenate(
        [jnp.exp(eta[:, out_dim:2 * out_dim]), eta[:, 2 * out_dim:]], axis=1
    )
    eta_dim = eta.shape[1]
    rows, cols = _tril_indices_coder(out_dim, eta_dim)
    B = eta.shape[0]
    Lam = jnp.zeros((B, out_dim, out_dim), jnp.float32)
    Lam = Lam.at[:, jnp.asarray(rows), jnp.asarray(cols)].set(lbda)
    return mu, Lam


def init_params(key, in_dim, hidden, out_dim):
    eta_dim = out_dim + out_dim * (out_dim + 1) // 2
    k1, k2 = jax.random.split(key, 2)
    s = 0.1
    return {
        "W1": s * jax.random.normal(k1, (in_dim, hidden), jnp.float32),
        "b1": jnp.zeros((1, hidden), jnp.float32),
        "W2": s * jax.random.normal(k2, (hidden, eta_dim), jnp.float32),
        "b2": jnp.zeros((1, eta_dim), jnp.float32),
    }


if __name__ == "__main__":
    B, in_dim, hidden, out_dim = 16, 16, 32, 8   # eta_dim = 8 + 36 = 44

    key = jax.random.PRNGKey(0)
    kx, kp = jax.random.split(key)
    x = jax.random.normal(kx, (B, in_dim), jnp.float32)
    params = init_params(kp, in_dim, hidden, out_dim)

    mu_r, tril_r = coder_forward_ref(x, params, out_dim)

    # f32 MXU-operand path (bit-tight check; the safe choice on v5e)
    prep_f32 = prepare_coder_params(params, out_dim, mxu_dtype=jnp.float32)
    mu, scale_tril = coder_forward(x, prep_f32, out_dim)
    jax.block_until_ready((mu, scale_tril))
    assert jnp.allclose(mu, mu_r, atol=1e-5)
    assert jnp.allclose(scale_tril, tril_r, atol=1e-5)

    # bf16 MXU-operand path (v6e/v7x preference; accumulation + elementwise f32)
    prep_bf16 = prepare_coder_params(params, out_dim, mxu_dtype=jnp.bfloat16)
    mu_b, tril_b = coder_forward(x, prep_bf16, out_dim)
    jax.block_until_ready((mu_b, tril_b))
    assert jnp.allclose(mu_b, mu_r, atol=5e-2, rtol=5e-2)
    assert jnp.allclose(tril_b, tril_r, atol=5e-2, rtol=5e-2)

    # sanity: valid scale_tril (positive diagonal, exactly-zero upper triangle)
    assert bool(jnp.all(jnp.diagonal(scale_tril, axis1=1, axis2=2) > 0))
    assert bool(jnp.all(jnp.triu(scale_tril, k=1) == 0))
    assert bool(jnp.all(jnp.diagonal(tril_b, axis1=1, axis2=2) > 0))
    assert bool(jnp.all(jnp.triu(tril_b, k=1) == 0))

    print("KERNEL_OK")
</pallas_src>

<mosaic_0001>
module attributes {stable_mosaic.version = 11 : i64} {
  func.func @coder_kernel(%arg0: i32, %arg1: memref<16x16xf32, #tpu.memory_space<vmem>>, %arg2: memref<16x32xf32, #tpu.memory_space<vmem>>, %arg3: memref<1x32xf32, #tpu.memory_space<vmem>>, %arg4: memref<32x128xf32, #tpu.memory_space<vmem>>, %arg5: memref<1x128xf32, #tpu.memory_space<vmem>>, %arg6: memref<1x128xf32, #tpu.memory_space<vmem>>, %arg7: memref<16x128xf32, #tpu.memory_space<vmem>>) attributes {dimension_semantics = [#tpu.dimension_semantics<parallel>], iteration_bounds = array<i64: 1>, scalar_prefetch = 0 : i64, scratch_operands = 0 : i64, tpu.core_type = #tpu.core_type<tc>, window_params = [{transform_indices = @transform_0, window_bounds = array<i64: 16, 16>}, {pipeline_mode = #tpu.pipeline_mode<synchronous>, transform_indices = @transform_1, window_bounds = array<i64: 16, 32>}, {pipeline_mode = #tpu.pipeline_mode<synchronous>, transform_indices = @transform_2, window_bounds = array<i64: 1, 32>}, {pipeline_mode = #tpu.pipeline_mode<synchronous>, transform_indices = @transform_3, window_bounds = array<i64: 32, 128>}, {pipeline_mode = #tpu.pipeline_mode<synchronous>, transform_indices = @transform_4, window_bounds = array<i64: 1, 128>}, {pipeline_mode = #tpu.pipeline_mode<synchronous>, transform_indices = @transform_5, window_bounds = array<i64: 1, 128>}, {transform_indices = @transform_6, window_bounds = array<i64: 16, 128>}]} {
    %c0 = arith.constant 0 : index
    %c0_0 = arith.constant 0 : index
    %0 = vector.load %arg1[%c0, %c0_0] : memref<16x16xf32, #tpu.memory_space<vmem>>, vector<16x16xf32>
    %c0_1 = arith.constant 0 : index
    %c0_2 = arith.constant 0 : index
    %1 = vector.load %arg2[%c0_1, %c0_2] : memref<16x32xf32, #tpu.memory_space<vmem>>, vector<16x32xf32>
    %cst = arith.constant dense<0.000000e+00> : vector<16x32xf32>
    %2 = tpu.matmul %0, %1, %cst {dimension_numbers = #tpu.dot_dimension_numbers<[1], [0], [0], [1], [0, 0, 1, 1], [], []>} : vector<16x16xf32>, vector<16x32xf32>, vector<16x32xf32> -> vector<16x32xf32>
    %c0_3 = arith.constant 0 : index
    %c0_4 = arith.constant 0 : index
    %3 = vector.load %arg3[%c0_3, %c0_4] : memref<1x32xf32, #tpu.memory_space<vmem>>, vector<1x32xf32>
    %4 = vector.broadcast %3 : vector<1x32xf32> to vector<16x32xf32>
    %5 = arith.addf %2, %4 : vector<16x32xf32>
    %6 = math.tanh %5 : vector<16x32xf32>
    %c0_5 = arith.constant 0 : index
    %c0_6 = arith.constant 0 : index
    %7 = vector.load %arg4[%c0_5, %c0_6] : memref<32x128xf32, #tpu.memory_space<vmem>>, vector<32x128xf32>
    %cst_7 = arith.constant dense<0.000000e+00> : vector<16x128xf32>
    %8 = tpu.matmul %6, %7, %cst_7 {dimension_numbers = #tpu.dot_dimension_numbers<[1], [0], [0], [1], [0, 0, 1, 1], [], []>} : vector<16x32xf32>, vector<32x128xf32>, vector<16x128xf32> -> vector<16x128xf32>
    %c0_8 = arith.constant 0 : index
    %c0_9 = arith.constant 0 : index
    %9 = vector.load %arg5[%c0_8, %c0_9] : memref<1x128xf32, #tpu.memory_space<vmem>>, vector<1x128xf32>
    %10 = vector.broadcast %9 : vector<1x128xf32> to vector<16x128xf32>
    %11 = arith.addf %8, %10 : vector<16x128xf32>
    %c0_10 = arith.constant 0 : index
    %c0_11 = arith.constant 0 : index
    %12 = vector.load %arg6[%c0_10, %c0_11] : memref<1x128xf32, #tpu.memory_space<vmem>>, vector<1x128xf32>
    %cst_12 = arith.constant 5.000000e-01 : f32
    %13 = vector.broadcast %cst_12 : f32 to vector<1x128xf32>
    %14 = arith.cmpf ogt, %12, %13 : vector<1x128xf32>
    %15 = math.exp %11 : vector<16x128xf32>
    %16 = vector.shape_cast %14 : vector<1x128xi1> to vector<1x128xi1>
    %17 = vector.broadcast %16 : vector<1x128xi1> to vector<16x128xi1>
    %18 = arith.select %17, %15, %11 : vector<16x128xi1>, vector<16x128xf32>
    %c0_13 = arith.constant 0 : index
    %c0_14 = arith.constant 0 : index
    %19 = vector.load %arg7[%c0_13, %c0_14] : memref<16x128xf32, #tpu.memory_space<vmem>>, vector<16x128xf32>
    tpu.vector_store %arg7[%c0_13, %c0_14], %18 {strides = array<i32>} : memref<16x128xf32, #tpu.memory_space<vmem>>, vector<16x128xf32>,
    return
  }
  func.func @transform_0(%arg0: i32) -> (i32, i32) {
    %c0_i32 = arith.constant 0 : i32
    %c0_i32_0 = arith.constant 0 : i32
    return %arg0, %c0_i32 : i32, i32
  }
  func.func @transform_1(%arg0: i32) -> (i32, i32) {
    %c0_i32 = arith.constant 0 : i32
    %c0_i32_0 = arith.constant 0 : i32
    %c0_i32_1 = arith.constant 0 : i32
    return %c0_i32, %c0_i32_0 : i32, i32
  }
  func.func @transform_2(%arg0: i32) -> (i32, i32) {
    %c0_i32 = arith.constant 0 : i32
    %c0_i32_0 = arith.constant 0 : i32
    %c0_i32_1 = arith.constant 0 : i32
    return %c0_i32, %c0_i32_0 : i32, i32
  }
  func.func @transform_3(%arg0: i32) -> (i32, i32) {
    %c0_i32 = arith.constant 0 : i32
    %c0_i32_0 = arith.constant 0 : i32
    %c0_i32_1 = arith.constant 0 : i32
    return %c0_i32, %c0_i32_0 : i32, i32
  }
  func.func @transform_4(%arg0: i32) -> (i32, i32) {
    %c0_i32 = arith.constant 0 : i32
    %c0_i32_0 = arith.constant 0 : i32
    %c0_i32_1 = arith.constant 0 : i32
    return %c0_i32, %c0_i32_0 : i32, i32
  }
  func.func @transform_5(%arg0: i32) -> (i32, i32) {
    %c0_i32 = arith.constant 0 : i32
    %c0_i32_0 = arith.constant 0 : i32
    %c0_i32_1 = arith.constant 0 : i32
    return %c0_i32, %c0_i32_0 : i32, i32
  }
  func.func @transform_6(%arg0: i32) -> (i32, i32) {
    %c0_i32 = arith.constant 0 : i32
    %c0_i32_0 = arith.constant 0 : i32
    return %arg0, %c0_i32 : i32, i32
  }
}

</mosaic_0001>

<bundles_post_ra>
// kernel: tpu_custom_call.1
= control target key start
LH: loop header
LB: loop body
LE: loop exit
PB: predicated region body
PF: predicated region fallthrough
CT: control target
= control target key end

     0   :  { %11 = vsyncpa [#allocation3], 0  ;;  %s560_s0 = inlined_call_operand.hbm [shape: f32[16,16], index: 0, kind: input, shape index: {}]   ;;  %s561_s1 = inlined_call_operand.hbm [shape: f32[16,32], index: 1, kind: input, shape index: {}]   ;;  %s562_s2 = inlined_call_operand.vmem [shape: f32[1,32], index: 2, kind: input, shape index: {}]   ;;  %s563_s3 = inlined_call_operand.hbm [shape: f32[32,128], index: 3, kind: input, shape index: {}]   ;;  %s564_s4 = inlined_call_operand.vmem [shape: f32[1,128], index: 4, kind: input, shape index: {}]   ;;  %s565_s5 = inlined_call_operand.vmem [shape: f32[1,128], index: 5, kind: input, shape index: {}]   ;;  %s566_s6 = inlined_call_operand.hbm [shape: f32[16,128], index: 6, kind: output, shape index: {}]  }
   0x1   :  { %12 = vsyncpa [#allocation6], 0 }
   0x2   :  { %13 = vsyncpa [#allocation4], 0  ;;  %s442_s21 = smov [#allocation5]   ;;  %s443_s23 = smov [#allocation2]  }
   0x3   :  { %s31_s22 = sshll.u32 %s442_s21, 4  ;;  %s19_s24 = sshll.u32 %s443_s23, 4  ;;  %s32_s22 = int_to_ptr.vmem [resolvable:$true] %s31_s22  ;;  %s484_s24 = int_to_ptr.vmem [resolvable:$true] %s19_s24 }
   0x4   :  { %s348_s27 = scalar_lea.hbm %s561_s1, 256 }
   0x5   :  { %p349_p0 = scmp.ne.s32.totalorder %s561_s1, %s348_s27  ;;  %p352_p1 = scmp.lt.u32.totalorder %s348_s27, %s561_s1 }
   0x7   :  { %p354_p2 = pnand %p352_p1, %p349_p0 }
   0x9   :  { %357 = shalt.err (!%p354_p2)
}
   0xa   :  { %s358_s8 = scalar_lea.vmem %s32_s22, 256  ;;  %p363_p4 = scmp.lt.s32.totalorder %s32_s22, %s32_s22 }
   0xb   :  { %p359_p3 = scmp.ne.s32.totalorder %s32_s22, %s358_s8  ;;  %p364_p5 = scmp.lt.s32.totalorder %s358_s8, %s358_s8 }
   0xd   :  { %p365_p6 = por %p364_p5, %p363_p4 }
   0xf   :  { %p366_p7 = pnand %p365_p6, %p359_p3 }
  0x11   :  { %369 = shalt.err (!%p366_p7)
}
  0x12   :  { %s444_s9 = smov 128   ;;  %s445_s10 = smov 8  }
  0x13   :  { %37 = dma.hbm_to_vmem [thread:$0]  %s561_s1, 256, %s32_s22, [#allocation6], %s444_s9, %s444_s9, %s445_s10  }
  0x14   :  { %s370_s15 = scalar_lea.hbm %s560_s0, 256 }
  0x15   :  { %p371_p8 = scmp.ne.s32.totalorder %s560_s0, %s370_s15  ;;  %p374_p9 = scmp.lt.u32.totalorder %s370_s15, %s560_s0 }
  0x17   :  { %p376_p10 = pnand %p374_p9, %p371_p8 }
  0x19   :  { %379 = shalt.err (!%p376_p10)
}
  0x1a   :  { %s380_s20 = scalar_lea.vmem %s484_s24, 256  ;;  %p385_p12 = scmp.lt.s32.totalorder %s484_s24, %s484_s24 }
  0x1b   :  { %p381_p11 = scmp.ne.s32.totalorder %s484_s24, %s380_s20  ;;  %p386_p13 = scmp.lt.s32.totalorder %s380_s20, %s380_s20 }
  0x1d   :  { %p387_p0 = por %p386_p13, %p385_p12 }
  0x1f   :  { %p388_p1 = pnand %p387_p0, %p381_p11 }
  0x21   :  { %391 = shalt.err (!%p388_p1)
}
  0x22   :  { %25 = dma.hbm_to_vmem [thread:$0]  %s560_s0, 256, %s484_s24, [#allocation3], %s444_s9, %s444_s9, %s445_s10  }
  0x23   :  { %s446_s22 = smov [#allocation7]   ;;  %s392_s27 = scalar_lea.hbm %s563_s3, 512 }
  0x24   :  { %s45_s23 = sshll.u32 %s446_s22, 4  ;;  %p393_p2 = scmp.ne.s32.totalorder %s563_s3, %s392_s27  ;;  %s46_s23 = int_to_ptr.vmem [resolvable:$true] %s45_s23 }
  0x25   :  { %p396_p3 = scmp.lt.u32.totalorder %s392_s27, %s563_s3 }
  0x27   :  { %p398_p4 = pnand %p396_p3, %p393_p2 }
  0x29   :  { %401 = shalt.err (!%p398_p4)
}
  0x2a   :  { %s402_s8 = scalar_lea.vmem %s46_s23, 512  ;;  %p407_p6 = scmp.lt.s32.totalorder %s46_s23, %s46_s23 }
  0x2b   :  { %p403_p5 = scmp.ne.s32.totalorder %s46_s23, %s402_s8  ;;  %p408_p7 = scmp.lt.s32.totalorder %s402_s8, %s402_s8 }
  0x2d   :  { %p409_p8 = por %p408_p7, %p407_p6 }
  0x2f   :  { %p410_p9 = pnand %p409_p8, %p403_p5 }
  0x31   :  { %413 = shalt.err (!%p410_p9)
}
  0x32   :  { %51 = dma.hbm_to_vmem [thread:$0]  %s563_s3, 512, %s46_s23, [#allocation6], %s444_s9, %s444_s9, %s445_s10  }
  0x33   :  { %436 = dma.done.wait [#allocation3], 256  }
  0x34   :  { %437 = vsyncadd [#allocation3], 4294967040 }
  0x35   :  { %438 = dma.done.wait [#allocation6], 768  }
  0x36   :  { %439 = vsyncadd [#allocation6], 4294966528  ;;  %vm76_vm0 = vcmask 130048   ;;  %v67_v0 = vld [vmem:[#allocation5] sm:$0xff]  ;;  %v68_v1 = vld [vmem:[#allocation5 + $0x8] sm:$0xff]  ;;  %vm171_vm1 = vcmask 261120   ;;  %v260_v18 = vlaneseq }
  0x37   :  { %v65_v2 = vld [vmem:[#allocation2] sm:$0xff]  ;;  %v321_v3 = vpack.c.bf16 %v68_v1, %v67_v0  ;;  %v66_v4 = vld [vmem:[#allocation2 + $0x8] sm:$0xff]  ;;  %v162_v7 = vld [vmem:[#allocation7 + $0x10] sm:$0xff]  ;;  %v447_v29 = vmov 0  }
  0x38   :  { %307 = vmatprep.mubr.msk.f32.mxu0 %vm76_vm0, %v65_v2  ;;  %v160_v5 = vld [vmem:[#allocation7] sm:$0xff]  ;;  %v161_v6 = vld [vmem:[#allocation7 + $0x8] sm:$0xff]  ;;  %v163_v9 = vld [vmem:[#allocation7 + $0x18] sm:$0xff]  ;;  %v261_v24 = vshrl.u32 %v260_v18, 7 }
  0x39   :  { %322 = vmatprep.subr.bf16.mxu0 %v321_v3  ;;  %v325_v8 = vpack.c.bf16 %v161_v6, %v160_v5  ;;  %v329_v10 = vpack.c.bf16 %v163_v9, %v162_v7  ;;  %v287_v11 = vld [vmem:[%s562_s2] ss:$0 sm:$0xff]  ;;  %s448_s2 = smov [#allocation8]  }
  0x3a   :  { %324 = vmatpush3.bf16.msra.mxu0 %v321_v3  ;;  %v290_v19 = vld [vmem:[%s564_s4] ss:$0 sm:$0xff]  ;;  %v262_v28 = vsub.s32 0, %v261_v24  ;;  %s274_s4 = sshll.u32 %s448_s2, 4  ;;  %s275_s4 = int_to_ptr.vmem [resolvable:$true] %s274_s4 }
  0x3b   :  { %326 = vmatprep.subr.bf16.mxu1 %v325_v8  ;;  %v253_v21 = vld [vmem:[%s565_s5] sm:$0x1]  ;;  %s414_s5 = scalar_lea.vmem %s275_s4, 256  ;;  %p419_p11 = scmp.lt.s32.totalorder %s275_s4, %s275_s4 }
  0x3c   :  { %328 = vmatpush3.bf16.msra.mxu1 %v325_v8  ;;  %vm254_vm2 = vcmp.gt.f32.partialorder %v253_v21, 0.5  ;;  %p415_p10 = scmp.ne.s32.totalorder %s275_s4, %s414_s5  ;;  %p420_p12 = scmp.lt.s32.totalorder %s414_s5, %s414_s5 }
  0x3d   :  { %308 = vmatmul.mubr.msk.f32.vlgmr.msra.gmra.mrb[0].mxu0 %vm76_vm0, %v66_v4  ;;  %330 = vmatprep.subr.bf16.mxu1 %v329_v10  ;;  %v259_v30 = vsel %vm254_vm2, 1, %v447_v29 }
  0x3e   :  { %v263_v31 = vrot.slane %v259_v30, %v262_v28  ;;  %p421_p13 = por %p420_p12, %p419_p11 }
  0x40   :  { %332 = vmatpush3.bf16.msra.mxu1 %v329_v10  ;;  %vm264_vm3 = vcmp.eq.s32.totalorder %v263_v31, 1  ;;  %p422_p0 = pnand %p421_p13, %p415_p10 }
 0x110   :  { %v309_v12 = vpop.f32.mrb[0].mxu0 }
 0x111   :  { %v155_v13 = vadd.f32 %v309_v12, %v287_v11  ;;  %v149_v14 = vpop.f32.mrb[1].mxu0 }
 0x112   :  { %v150_v15 = vadd.f32 %v287_v11, %v149_v14 }
 0x114   :  { %340 = vtanh.f32 %v150_v15 }
 0x115   :  { %342 = vtanh.f32 %v155_v13 }
 0x11e   :  { %v341_v16 = vpop.eup %340 }
 0x11f   :  { %v343_v17 = vpop.eup %342  ;;  %318 = vmatprep.mubr.msk.f32.mxu1 %vm171_vm1, %v341_v16 }
 0x120   :  { %319 = vmatmul.mubr.msk.f32.vlgmr.msra.gmra.mrb[0].mxu1 %vm171_vm1, %v343_v17 }
 0x1f3   :  { %v320_v20 = vpop.f32.mrb[0].mxu1 }
 0x1f4   :  { %v250_v22 = vadd.f32 %v320_v20, %v290_v19  ;;  %v244_v23 = vpop.f32.mrb[1].mxu1 }
 0x1f5   :  { %v245_v25 = vadd.f32 %v290_v19, %v244_v23 }
 0x1f6   :  { %v257_v26 = vmul.f32 1.442695, %v250_v22 }
 0x1f7   :  { %v255_v27 = vmul.f32 1.442695, %v245_v25 }
 0x1f8   :  { %344 = vpow2.f32 %v257_v26 }
 0x1f9   :  { %346 = vpow2.f32 %v255_v27 }
 0x202   :  { %v345_v32 = vpop.eup %344 }
 0x203   :  { %v347_v33 = vpop.eup %346  ;;  %v266_v34 = vsel %vm264_vm3, %v345_v32, %v250_v22 }
 0x204   :  { %v265_v35 = vsel %vm264_vm3, %v347_v33, %v245_v25  ;;  %268 = vst [vmem:[#allocation8 + $0x8] sm:$0xff] %v266_v34 }
 0x205   :  { %267 = vst [vmem:[#allocation8] sm:$0xff] %v265_v35 }
 0x206   :  { %425 = shalt.err (!%p422_p0)
}
 0x207   :  { %s426_s18 = scalar_lea.hbm %s566_s6, 256 }
 0x208   :  { %p427_p1 = scmp.ne.s32.totalorder %s566_s6, %s426_s18  ;;  %p430_p2 = scmp.lt.u32.totalorder %s426_s18, %s566_s6 }
 0x20a   :  { %p432_p3 = pnand %p430_p2, %p427_p1 }
 0x20c   :  { %435 = shalt.err (!%p432_p3)
}
 0x20d   :  { %280 = dma.vmem_to_hbm [thread:$0]  %s275_s4, 256, %s566_s6, [#allocation4], %s444_s9, %s444_s9, %s445_s10  }
 0x20e   :  { %440 = dma.done.wait [#allocation4], 256  }
 0x20f   :  { %441 = vsyncadd [#allocation4], 4294967040 }
 0x210   :  { %284 = vsyncpa [#allocation3], 1 }
 0x211   :  { %285 = vsyncpa [#allocation6], 1 }
 0x212   :  { %286 = vsyncpa [#allocation4], 1 }

</bundles_post_ra>
